<compile_context>
chip_gen: v6e
topology: v6e:2x2x1
jax: 0.10.0
libtpu: 0.0.40
codegen_flags: <defaults>
</compile_context>

<pallas_src>
import jax
import jax.numpy as jnp
import numpy as np
from jax import lax
from jax.experimental import pallas as pl
from jax.experimental.pallas import tpu as pltpu


def _rope_kernel(x_ref, cos_ref, sin_ref, o_ref):
    # x_ref / o_ref: (tB, tT, C) interleaved channel pairs.
    # cos_ref / sin_ref: (tT, C) full-width rotation tables (f32); broadcast
    # over the leading batch-tile dim for free.
    x = x_ref[...].astype(jnp.float32)
    c = cos_ref[...]
    s = sin_ref[...]
    lane_axis = x.ndim - 1
    n_lanes = x.shape[lane_axis]
    # Pair swap along the lane axis, done on-chip (XLU rotate + VPU select):
    #   swapped[..., 2j]   = x[..., 2j+1]
    #   swapped[..., 2j+1] = x[..., 2j]
    # NOTE: the roll wrap-around lanes (nxt[..., C-1]=x[..., 0],
    # prv[..., 0]=x[..., C-1]) are never selected by the parity mask below —
    # this invariant is what makes the pair swap exact.
    nxt = pltpu.roll(x, shift=n_lanes - 1, axis=lane_axis)  # nxt[..., i] = x[..., (i+1) % C]
    prv = pltpu.roll(x, shift=1, axis=lane_axis)            # prv[..., i] = x[..., (i-1) % C]
    lane = lax.broadcasted_iota(jnp.int32, x.shape, lane_axis)
    swapped = jnp.where((lane & 1) == 0, nxt, prv)
    # sin table carries the sign: [2j] = -sin, [2j+1] = +sin, so
    #   out[2j]   = xe*cos - xo*sin
    #   out[2j+1] = xo*cos + xe*sin        (complex multiply by cos + i*sin)
    o_ref[...] = (x * c + swapped * s).astype(o_ref.dtype)


def _choose_tiles(B, T, C, itemsize, target_bytes=2 << 20):
    """Pick (tB, tT): ~target_bytes of x per grid step, lane-dense, 8-aligned T."""
    row_bytes = C * itemsize
    max_rows = max(8, target_bytes // max(1, row_bytes))
    if T <= max_rows:
        tT = T                                  # full extent — always legal
    else:
        tT = max(8, (max_rows // 8) * 8)        # sub-tile must be a multiple of 8
    blk_bytes = tT * row_bytes
    # Fold batch into the block when a single (tT, C) slab is still small
    # (keeps per-step DMA large for decode / short-prefill shapes).
    tB = int(max(1, min(B, target_bytes // max(1, blk_bytes))))
    # Keep >= 2 grid steps when possible so v7x's two TensorCores both get work.
    if pl.cdiv(T, tT) * pl.cdiv(B, tB) < 2 and B > 1:
        tB = pl.cdiv(B, 2)
    return tB, tT


class RoPE:
    """JAX/Pallas port of the PyTorch RoPE module (forward pass)."""

    def __init__(self, n_embed, max_len, theta=10000):
        assert n_embed % 2 == 0
        self.n_embed = n_embed
        self.max_len = max_len
        angles = 1.0 / theta ** (
            jnp.arange(0, n_embed, 2, dtype=jnp.float32) / n_embed
        )                                                    # (C//2,)
        seqs = jnp.arange(max_len, dtype=jnp.float32)        # (max_len,)
        theta_seq = seqs[:, None] * angles[None, :]          # (max_len, C//2)
        cos = jnp.cos(theta_seq)                             # torch.polar real part
        sin = jnp.sin(theta_seq)                             # torch.polar imag part
        # half-width tables kept only for the reference check below
        self.cos = cos
        self.sin = sin
        # one-time full-width expansion: cos duplicated per pair,
        # sin with alternating sign baked in -> kernel does no pair bookkeeping.
        self.cos_full = jnp.repeat(cos, 2, axis=-1)                          # (max_len, C)
        self.sin_signed = jnp.stack([-sin, sin], axis=-1).reshape(max_len, n_embed)

    def __call__(self, x):
        B, T, C = x.shape
        assert T <= self.max_len
        assert C == self.n_embed
        # Lane-dense contract: best perf when C is a multiple of 128 (sub-128
        # last dims trigger masked partial stores). Per-head RoPE callers
        # should fold heads into the last dim before calling.

        itemsize = jnp.dtype(x.dtype).itemsize
        tB, tT = _choose_tiles(B, T, C, itemsize)
        num_t = pl.cdiv(T, tT)
        num_b = pl.cdiv(B, tB)

        # VMEM budget derived from the actual blocks:
        #   x + out double-buffered, tables single-buffered, plus a generous
        #   allowance for in-kernel f32 temporaries (roll/select chain).
        x_blk = tB * tT * C * itemsize
        f32_blk = tB * tT * C * 4
        tbl_blk = tT * C * 4
        need = 4 * x_blk + 2 * tbl_blk + 8 * f32_blk
        vmem_limit = int(min(48 * 1024 * 1024, need + 4 * 1024 * 1024))

        grid_spec = pltpu.PrefetchScalarGridSpec(
            num_scalar_prefetch=0,
            # T tiles outer, batch tiles inner: cos/sin block indices depend
            # only on the T tile, so they stay VMEM-resident across the whole
            # inner batch loop (single-buffered -> no wasted second buffer).
            grid=(num_t, num_b),
            in_specs=[
                pl.BlockSpec((tB, tT, C), lambda t, b: (b, t, 0)),   # x (interleaved)
                pl.BlockSpec((tT, C), lambda t, b: (t, 0),
                             pipeline_mode=pl.Buffered(1)),          # cos_full
                pl.BlockSpec((tT, C), lambda t, b: (t, 0),
                             pipeline_mode=pl.Buffered(1)),          # sin_signed
            ],
            out_specs=pl.BlockSpec((tB, tT, C), lambda t, b: (b, t, 0)),
        )
        # NOTE: when ceil(T/tT)*tT > max_len the last table block read extends
        # past the table rows; Pallas pads blocked OOB reads and the matching
        # output rows are masked, so this is benign (would only matter if the
        # table fetch were ever converted to a manual, unchecked DMA).

        return pl.pallas_call(
            _rope_kernel,
            out_shape=jax.ShapeDtypeStruct((B, T, C), x.dtype),
            grid_spec=grid_spec,
            # RoPE is shape/dtype preserving and every block is read before it
            # is written -> output may reuse x's HBM buffer when donated.
            input_output_aliases={0: 0},
            compiler_params=pltpu.CompilerParams(
                dimension_semantics=("parallel", "parallel"),
                vmem_limit_bytes=vmem_limit,
            ),
        )(x, self.cos_full, self.sin_signed)


def _reference_rope(x, cos, sin):
    # Independent NumPy reference using the half-width tables and the standard
    # complex-multiply formulation (mirrors torch.view_as_complex * torch.polar).
    x = np.asarray(x)
    cos = np.asarray(cos)
    sin = np.asarray(sin)
    B, T, C = x.shape
    half = C // 2
    xp = x.reshape(B, T, half, 2)
    xe, xo = xp[..., 0], xp[..., 1]
    c, s = cos[None, :T], sin[None, :T]
    oe = xe * c - xo * s
    oo = xe * s + xo * c
    return np.stack([oe, oo], axis=-1).reshape(B, T, C)


if __name__ == "__main__":
    # Small but lane-dense shapes (C = 128 exercises the real (8,128) path).
    B, T, C, MAX_LEN = 2, 16, 128, 32

    key = jax.random.PRNGKey(0)
    x = jax.random.normal(key, (B, T, C), dtype=jnp.float32)

    rope = RoPE(n_embed=C, max_len=MAX_LEN, theta=10000)

    # Compute the reference from x BEFORE the call (the kernel declares an
    # input/output alias; x is not donated here so it is preserved, but this
    # keeps the check independent of buffer-donation behavior).
    ref = _reference_rope(x, rope.cos, rope.sin)

    out = jax.block_until_ready(rope(x))
    np.testing.assert_allclose(np.asarray(out), ref, rtol=1e-5, atol=1e-5)

    print("KERNEL_OK")
</pallas_src>

<mosaic_0001>
module attributes {stable_mosaic.version = 11 : i64} {
  func.func @_rope_kernel(%arg0: i32, %arg1: i32, %arg2: memref<1x16x128xf32, #tpu.memory_space<vmem>>, %arg3: memref<16x128xf32, #tpu.memory_space<vmem>>, %arg4: memref<16x128xf32, #tpu.memory_space<vmem>>, %arg5: memref<1x16x128xf32, #tpu.memory_space<vmem>>) attributes {dimension_semantics = [#tpu.dimension_semantics<parallel>, #tpu.dimension_semantics<parallel>], iteration_bounds = array<i64: 1, 2>, scalar_prefetch = 0 : i64, scratch_operands = 0 : i64, tpu.core_type = #tpu.core_type<tc>, window_params = [{transform_indices = @transform_0, window_bounds = array<i64: 1, 16, 128>}, {pipeline_mode = #tpu.pipeline_mode<synchronous>, transform_indices = @transform_1, window_bounds = array<i64: 16, 128>}, {pipeline_mode = #tpu.pipeline_mode<synchronous>, transform_indices = @transform_2, window_bounds = array<i64: 16, 128>}, {transform_indices = @transform_3, window_bounds = array<i64: 1, 16, 128>}]} {
    %c0 = arith.constant 0 : index
    %c0_0 = arith.constant 0 : index
    %c0_1 = arith.constant 0 : index
    %0 = vector.load %arg2[%c0, %c0_0, %c0_1] : memref<1x16x128xf32, #tpu.memory_space<vmem>>, vector<1x16x128xf32>
    %c0_2 = arith.constant 0 : index
    %c0_3 = arith.constant 0 : index
    %1 = vector.load %arg3[%c0_2, %c0_3] : memref<16x128xf32, #tpu.memory_space<vmem>>, vector<16x128xf32>
    %c0_4 = arith.constant 0 : index
    %c0_5 = arith.constant 0 : index
    %2 = vector.load %arg4[%c0_4, %c0_5] : memref<16x128xf32, #tpu.memory_space<vmem>>, vector<16x128xf32>
    %c127_i32 = arith.constant 127 : i32
    %3 = tpu.dynamic_rotate %0 by %c127_i32 dim 2 : vector<1x16x128xf32>, i32 -> vector<1x16x128xf32>
    %c1_i32 = arith.constant 1 : i32
    %4 = tpu.dynamic_rotate %0 by %c1_i32 dim 2 : vector<1x16x128xf32>, i32 -> vector<1x16x128xf32>
    %5 = tpu.iota {dimensions = array<i32: 2>} : vector<1x16x128xi32>
    %c1_i32_6 = arith.constant 1 : i32
    %6 = vector.broadcast %c1_i32_6 : i32 to vector<1x16x128xi32>
    %7 = arith.andi %5, %6 : vector<1x16x128xi32>
    %c0_i32 = arith.constant 0 : i32
    %8 = vector.broadcast %c0_i32 : i32 to vector<1x16x128xi32>
    %9 = arith.cmpi eq, %7, %8 : vector<1x16x128xi32>
    %10 = arith.select %9, %3, %4 : vector<1x16x128xi1>, vector<1x16x128xf32>
    %11 = vector.shape_cast %1 : vector<16x128xf32> to vector<1x16x128xf32>
    %12 = arith.mulf %0, %11 : vector<1x16x128xf32>
    %13 = vector.shape_cast %2 : vector<16x128xf32> to vector<1x16x128xf32>
    %14 = arith.mulf %10, %13 : vector<1x16x128xf32>
    %15 = arith.addf %12, %14 : vector<1x16x128xf32>
    %c0_7 = arith.constant 0 : index
    %c0_8 = arith.constant 0 : index
    %c0_9 = arith.constant 0 : index
    %16 = vector.load %arg5[%c0_7, %c0_8, %c0_9] : memref<1x16x128xf32, #tpu.memory_space<vmem>>, vector<1x16x128xf32>
    tpu.vector_store %arg5[%c0_7, %c0_8, %c0_9], %15 {strides = array<i32>} : memref<1x16x128xf32, #tpu.memory_space<vmem>>, vector<1x16x128xf32>,
    return
  }
  func.func @transform_0(%arg0: i32, %arg1: i32) -> (i32, i32, i32) {
    %c0_i32 = arith.constant 0 : i32
    %c0_i32_0 = arith.constant 0 : i32
    return %arg1, %arg0, %c0_i32 : i32, i32, i32
  }
  func.func @transform_1(%arg0: i32, %arg1: i32) -> (i32, i32) {
    %c0_i32 = arith.constant 0 : i32
    %c0_i32_0 = arith.constant 0 : i32
    return %arg0, %c0_i32 : i32, i32
  }
  func.func @transform_2(%arg0: i32, %arg1: i32) -> (i32, i32) {
    %c0_i32 = arith.constant 0 : i32
    %c0_i32_0 = arith.constant 0 : i32
    return %arg0, %c0_i32 : i32, i32
  }
  func.func @transform_3(%arg0: i32, %arg1: i32) -> (i32, i32, i32) {
    %c0_i32 = arith.constant 0 : i32
    %c0_i32_0 = arith.constant 0 : i32
    return %arg1, %arg0, %c0_i32 : i32, i32, i32
  }
}

</mosaic_0001>

<bundles_post_ra>
// kernel: tpu_custom_call.1
= control target key start
LH: loop header
LB: loop body
LE: loop exit
PB: predicated region body
PF: predicated region fallthrough
CT: control target
= control target key end

     0   :  { %8 = vsyncpa [#allocation3], 0  ;;  %s805_s0 = inlined_call_operand.hbm [shape: f32[2,16,128], index: 0, kind: input, shape index: {}, may-alias: {0,3}]   ;;  %s806_s1 = inlined_call_operand.vmem [shape: f32[32,128], index: 1, kind: input, shape index: {}]   ;;  %s807_s2 = inlined_call_operand.vmem [shape: f32[32,128], index: 2, kind: input, shape index: {}]   ;;  %s808_s3 = inlined_call_operand.hbm [shape: f32[2,16,128], index: 3, kind: output, shape index: {}, may-alias: {0,3}]  }
   0x1   :  { %10 = vsyncpa [#allocation3 + $0x1], 0 }
   0x2   :  { %11 = vsyncpa [#allocation4], 0 }
   0x3   :  { %13 = vsyncpa [#allocation4 + $0x1], 0  ;;  %s639_s12 = smov 0   ;;  %s641_s13 = smov 0  }
   0x4   :  { %s643_s14 = smov 0   ;;  %s645_s15 = smov 0  }
   0x5   :  { %s647_s16 = smov 0   ;;  %s649_s17 = smov 0  }
   0x6 LB: > { %s414_s18 = sadd.s32 4294967295, %s609_s17   ;;  %s415_s19 = sadd.s32 4294967294, %s609_s17   ;;  %s609_s17 = sphi %s649_s17, %s19_s17   ;;  %s605_s16 = sphi %s647_s16, %s821_s16   ;;  %s601_s15 = sphi %s645_s15, %s820_s15   ;;  %s597_s14 = sphi %s643_s14, %s819_s14   ;;  %s593_s13 = sphi %s641_s13, %s818_s13   ;;  %s589_s12 = sphi %s639_s12, %s817_s12  }
   0x7   : > { %s28_s20 = sadd.s32 1, %s605_s16  ;;  %s40_s21 = sadd.s32 1, %s597_s14 }
   0x8   : > { %p29_p0 = scmp.ge.s32.totalorder %s28_s20, 2  ;;  %p47_p1 = scmp.ne.s32.totalorder %s597_s14, %s593_s13 }
   0x9   : > { %p48_p2 = scmp.eq.s32.totalorder %s609_s17, 0  ;;  %p53_p3 = scmp.ne.s32.totalorder %s593_s13, %s589_s12 }
   0xa   : > { %s823_s20 = smov (%p29_p0, %s28_s20), 0  ;;  %p54_p5 = scmp.eq.s32.totalorder %s414_s18, 0 }
   0xb   : > { %p680_p4 = por %p48_p2, %p47_p1  ;;  %s35_s23 = ssub.s32 %s605_s16, %s823_s20 }
   0xc   : > { %p131_p6 = scmp.eq.s32.totalorder %s414_s18, 1  ;;  %p38_p7 = scmp.eq.s32.totalorder %s35_s23, 0 }
   0xd   : > { %p686_p8 = por %p54_p5, %p53_p3  ;;  %p137_p10 = scmp.eq.s32.totalorder %s415_s19, 1 }
   0xe   : > { %p690_p9 = por %p131_p6, %p47_p1  ;;  %p445_p13 = scmp.lt.s32.totalorder %s609_s17, 2 }
   0xf   : > { %s695_s26 = scalar_select %p38_p7, %s597_s14, %s40_s21  }
  0x10   : > { %p697_p11 = por %p137_p10, %p53_p3  ;;  %s175_s28 = sand.u32 1, %s597_s14  }
  0x11   : > { %s420_s29 = sshll.u32 %s175_s28, 4  ;;  %s431_s30 = sshll.u32 %s605_s16, 8 }
  0x12   : > { %s187_s6 = scalar_lea.hbm %s805_s0, %s431_s30  ;;  %s179_s7 = scalar_lea.vmem [#allocation2], %s420_s29 }
  0x13   : > { %s188_s8 = sshll.u32 %s179_s7, 4  ;;  %p710_p0 = pnand %p445_p13, %p680_p4  ;;  %s189_s8 = int_to_ptr.vmem [resolvable:$true] %s188_s8 }
  0x14   : > { %p423_p1 = scmp.ge.s32.totalorder %s609_s17, 1  ;;  %s176_s10 = scalar_lea.sflag [#allocation3], %s175_s28 }
  0x15   : > { %p503_p2 = pneg %p710_p0  ;;  %s514_s11 = scalar_lea.vmem %s189_s8, 256 }
  0x16   : > { %p515_p3 = scmp.ne.s32.totalorder %s189_s8, %s514_s11  ;;  %s611_s18 = smov [#allocation2]  }
  0x17   : > { %s519_s19 = sshll.u32 %s611_s18, 4  ;;  %s520_s19 = int_to_ptr.vmem [resolvable:$false] %s519_s19 }
  0x18   : > { %p517_p5 = pnand %p515_p3, %p503_p2  ;;  %s521_s21 = scalar_lea.vmem %s520_s19, 512 }
  0x19   : > { %p522_p7 = scmp.lt.s32.totalorder %s189_s8, %s520_s19  ;;  %p523_p10 = scmp.lt.s32.totalorder %s521_s21, %s514_s11 }
  0x1a   : > { %p518_p6 = pneg %p517_p5 }
  0x1b   : > { %p524_p12 = por %p523_p10, %p522_p7 }
  0x1d   : > { %p525_p4 = pnand %p524_p12, %p518_p6 }
  0x1f   : > { %528 = shalt.err (!%p525_p4)
}
  0x20   : > { %s612_s22 = smov 128   ;;  %s613_s23 = smov 8  }
  0x21   : > { %440 = dma.hbm_to_vmem [thread:$0]  (!%p710_p0), %s187_s6, 256, %s189_s8, %s176_s10, %s612_s22, %s612_s22, %s613_s23  }
  0x22   : > { %p196_p13 = scmp.lt.s32.totalorder %s609_s17, 3 }
  0x24   : > { %p197_p2 = pnand %p423_p1, %p196_p13 }
  0x25   : > { %s723_s28 = sand.u32 (!%p197_p2), 1, %s593_s13  }
  0x26   : > { %200 = sbr.rel (%p197_p2) target bundleno = 183 (0xb7), region = 32  ;;  %s424_s29 = sshll.u32 (!%p197_p2), %s723_s28, 4 }
  0x27   : > { %s203_s30 = scalar_lea.sflag (!%p197_p2), [#allocation3], %s723_s28  ;;  %s206_s4 = scalar_lea.vmem (!%p197_p2), [#allocation2], %s424_s29 }
  0x2b   : > { %580 = dma.done.wait (%p686_p8), %s203_s30, 256  }
  0x2c   : > { %582 = vsyncadd (%p686_p8), %s203_s30, 4294967040  ;;  %v253_v0 = vld [vmem:[%s206_s4] sm:$0xff]  ;;  %s614_s5 = smov 1   ;;  %s615_s6 = smov 127   ;;  %v254_v1 = vld [vmem:[%s206_s4 + $0x8] sm:$0xff]  ;;  %v267_v2 = vlaneseq }
  0x2d   : > { %263 = vrot.lane.b32.xlu1 %v253_v0, %s614_s5  ;;  %259 = vrot.lane.b32.xlu0 %v253_v0, %s615_s6  ;;  %v255_v5 = vld [vmem:[%s806_s1] sm:$0xff]  ;;  %v256_v11 = vld [vmem:[%s806_s1 + $0x8] sm:$0xff]  ;;  %s238_s18 = scalar_lea.vmem [#allocation5], %s424_s29  ;;  %s432_s23 = sshll.u32 %s601_s15, 8 }
  0x2e   : > { %v268_v3 = vand.u32 127, %v267_v2  ;;  %v257_v7 = vld [vmem:[%s807_s2] sm:$0xff]  ;;  %v273_v8 = vmul.f32 %v255_v5, %v253_v0  ;;  %s297_s19 = sshll.u32 %s238_s18, 4  ;;  %v258_v14 = vld [vmem:[%s807_s2 + $0x8] sm:$0xff]  ;;  %v274_v15 = vmul.f32 %v256_v11, %v254_v1  ;;  %s757_s4 = scalar_lea.hbm %s808_s3, %s432_s23  ;;  %s752_s19 = int_to_ptr.vmem [resolvable:$true] %s297_s19 }
  0x2f   : > { %s616_s15 = smov [#allocation5]  }
  0x30   : > { %v269_v4 = vand.u32 1, %v268_v3  ;;  %s533_s7 = sshll.u32 %s616_s15, 4  ;;  %s534_s7 = int_to_ptr.vmem [resolvable:$false] %s533_s7 }
  0x31   : > { %265 = vrot.lane.b32.xlu1 %v254_v1, %s614_s5  ;;  %261 = vrot.lane.b32.xlu0 %v254_v1, %s615_s6  ;;  %s282_s5 = scalar_lea.sflag [#allocation4], %s723_s28  ;;  %s529_s6 = scalar_lea.vmem %s752_s19, 256 }
  0x32   : > { %vm734_vm0 = vcmp.eq.s32.totalorder %v269_v4, 0  ;;  %p530_p8 = scmp.ne.s32.totalorder %s752_s19, %s529_s6  ;;  %s535_s8 = scalar_lea.vmem %s534_s7, 512 }
  0x33   : > { %p536_p1 = scmp.lt.s32.totalorder %s752_s19, %s534_s7  ;;  %p537_p3 = scmp.lt.s32.totalorder %s535_s8, %s529_s6 }
  0x34   : > { %p531_p12 = pnand %p530_p8, %p690_p9 }
  0x35   : > { %p538_p5 = por %p537_p3, %p536_p1 }
  0x36   : > { %p532_p0 = pneg %p531_p12 }
  0x38   : > { %p539_p6 = pnand %p538_p5, %p532_p0 }
  0x9f   : > { %v264_v9 = vpop.permute.xlu1 %263  ;;  %v260_v10 = vpop.permute.xlu0 %259 }
  0xa0   : > { %v271_v12 = vsel %vm734_vm0, %v260_v10, %v264_v9 }
  0xa1   : > { %v275_v13 = vmul.f32 %v271_v12, %v257_v7 }
  0xa3   : > { %v277_v16 = vadd.f32 %v275_v13, %v273_v8  ;;  %v266_v17 = vpop.permute.xlu1 %265  ;;  %v262_v18 = vpop.permute.xlu0 %261 }
  0xa4   : > { %v272_v19 = vsel %vm734_vm0, %v262_v18, %v266_v17 }
  0xa5   : > { %279 = vst [vmem:[%s238_s18] sm:$0xff] %v277_v16  ;;  %v276_v20 = vmul.f32 %v272_v19, %v258_v14 }
  0xa7   : > { %v278_v21 = vadd.f32 %v276_v20, %v274_v15 }
  0xa9   : > { %280 = vst [vmem:[%s238_s18 + $0x8] sm:$0xff] %v278_v21 }
  0xaa   : > { %542 = shalt.err (!%p539_p6)
}
  0xab   : > { %s543_s24 = scalar_lea.hbm %s757_s4, 256  ;;  %s547_s11 = scalar_lea.hbm %s808_s3, 512 }
  0xac   : > { %p544_p7 = scmp.ne.s32.totalorder %s757_s4, %s543_s24  ;;  %p548_p13 = scmp.lt.s32.totalorder %s757_s4, %s808_s3 }
  0xad   : > { %p549_p2 = scmp.lt.s32.totalorder %s547_s11, %s543_s24 }
  0xae   : > { %p545_p10 = pnand %p544_p7, %p690_p9 }
  0xaf   : > { %p550_p8 = por %p549_p2, %p548_p13 }
  0xb0   : > { %p546_p4 = pneg %p545_p10 }
  0xb2   : > { %p551_p12 = pnand %p550_p8, %p546_p4 }
  0xb4   : > { %554 = shalt.err (!%p551_p12)
}
  0xb5   : > { %s617_s22 = smov 128   ;;  %s618_s23 = smov 8  }
  0xb6   : > { %435 = dma.vmem_to_hbm [thread:$0]  (%p690_p9), %s752_s19, 256, %s757_s4, %s282_s5, %s617_s22, %s617_s22, %s618_s23  }
  0xb7 PF: > { %s312_s29 = sand.u32 1, %s589_s12   ;;  %p816_p0 = scmp.ge.s32.totalorder %s609_s17, 2 }
  0xb8   : > { %s313_s30 = scalar_lea.sflag [#allocation4], %s312_s29 }
  0xb9   : > { %p442_p1 = pnand %p816_p0, %p697_p11 }
  0xbb   : > { %p443_p3 = pneg %p442_p1 }
  0xbd   : > { %584 = dma.done.wait (%p443_p3), %s313_s30, 256  }
  0xbe   : > { %586 = vsyncadd (%p443_p3), %s313_s30, 4294967040  ;;  %s19_s17 = sadd.s32 1, %s609_s17   ;;  %s817_s12 = smov %s593_s13 }
  0xbf   : > { %p16_p5 = scmp.ge.s32.totalorder %s19_s17, 4   ;;  %s818_s13 = smov %s597_s14 }
  0xc0   : > { %s819_s14 = smov %s695_s26  ;;  %s820_s15 = smov %s605_s16 }
  0xc1   : > { %s821_s16 = smov %s823_s20  ;;  %18 = sbr.rel (!%p16_p5) target bundleno = 6 (0x6), region = 83 }
  0xc6   :  { %318 = vsyncpa [#allocation3], 1 }
  0xc7   :  { %320 = vsyncpa [#allocation3 + $0x1], 1 }
  0xc8   :  { %321 = vsyncpa [#allocation4], 1 }
  0xc9   :  { %323 = vsyncpa [#allocation4 + $0x1], 1 }

</bundles_post_ra>
